<compile_context>
chip_gen: v6e
topology: v6e:2x2x1
jax: 0.10.0
libtpu: 0.0.40
codegen_flags: <defaults>
</compile_context>

<pallas_src>
import math

import jax
import jax.numpy as jnp
from jax.experimental import pallas as pl
from jax.experimental.pallas import tpu as pltpu


def _round_up(n, m):
    return ((n + m - 1) // m) * m


def _make_tcn_block_kernel(bt, T, Cp_in, Cp_out, K, dilation, has_ds):
    """Fused TCN block kernel operating on one batch tile of `bt` samples."""
    halo = (K - 1) * dilation
    halo_s = _round_up(halo, 8) if halo > 0 else 0  # sublane-aligned causal pad

    def kernel(x_ref, w_ref, b_ref, *rest):
        if has_ds:
            bd_ref, out_ref, xpad_ref = rest
        else:
            out_ref, xpad_ref = rest

        # Stage ONE left-zero-padded copy of x in VMEM scratch (aligned stores).
        if halo_s > 0:
            xpad_ref[:, :halo_s, :] = jnp.zeros((bt, halo_s, Cp_in), jnp.float32)
        xpad_ref[:, halo_s:, :] = x_ref[...]

        # im2col: tap i needs x[t - (K-1-i)*dilation]  ->  padded rows
        # [halo_s - (K-1-i)*dilation, ... + T).  Static slices, no copies of zeros
        # beyond the pad region, no per-tap concatenate with zeros.
        taps = []
        for i in range(K):
            start = halo_s - (K - 1 - i) * dilation
            taps.append(xpad_ref[:, start:start + T, :])
        a = jnp.concatenate(taps, axis=-1).reshape(bt * T, K * Cp_in)

        # Single MXU matmul: conv taps (+ 1x1 downsample as extra output columns).
        y = jnp.dot(a.astype(w_ref.dtype), w_ref[...],
                    preferred_element_type=jnp.float32)

        if has_ds:
            conv = y[:, :Cp_out]
            res = y[:, Cp_out:] + bd_ref[...]
        else:
            conv = y
            # identity residual (C_in == C_out), exact f32 path
            res = x_ref[...].reshape(bt * T, Cp_in)

        h = jnp.maximum(conv + b_ref[...], 0.0)   # ReLU; dropout = identity (eval)
        out = jnp.maximum(h + res, 0.0)           # residual add + final ReLU
        out_ref[...] = out.reshape(bt, T, Cp_out).astype(out_ref.dtype)

    return kernel


def tcn_block_forward(x, conv_w, conv_b, ds_w, ds_b, dilation, *,
                      batch_tile=None, matmul_dtype=jnp.bfloat16):
    """Pallas TCNBlock forward.

    x:       (B, C_in, T)  float32 (PyTorch Conv1d layout)
    conv_w:  (C_out, C_in, K), conv_b: (C_out,)
    ds_w:    (C_out, C_in, 1) or None, ds_b: (C_out,) or None
    returns  (B, C_out, T) float32
    """
    B, C_in, T = x.shape
    C_out, _, K = conv_w.shape
    has_ds = ds_w is not None
    if not has_ds:
        assert C_in == C_out, "identity residual requires C_in == C_out"

    Cp_in = _round_up(C_in, 128)
    Cp_out = _round_up(C_out, 128)
    Nw = 2 * Cp_out if has_ds else Cp_out
    halo = (K - 1) * dilation
    halo_s = _round_up(halo, 8) if halo > 0 else 0

    if batch_tile is None:
        batch_tile = B  # fold the whole batch into one grid step for small problems
    bt = batch_tile
    assert B % bt == 0

    # Channels-last, lane-padded input: (B, T, Cp_in).
    xcl = jnp.transpose(x, (0, 2, 1))
    if Cp_in > C_in:
        xcl = jnp.pad(xcl, ((0, 0), (0, 0), (0, Cp_in - C_in)))

    # Pack the K conv taps (and the 1x1 downsample) into one (K*Cp_in, Nw) matrix.
    # Row block i holds tap i (shift (K-1-i)*dilation); downsample sits in the
    # unshifted tap's rows, in the second Cp_out output-column block.
    Wc = jnp.zeros((K, Cp_in, Nw), jnp.float32)
    Wc = Wc.at[:, :C_in, :C_out].set(jnp.transpose(conv_w, (2, 1, 0)))
    if has_ds:
        wd2 = ds_w.reshape(C_out, C_in)
        Wc = Wc.at[K - 1, :C_in, Cp_out:Cp_out + C_out].set(wd2.T)
    Wc = Wc.reshape(K * Cp_in, Nw).astype(matmul_dtype)

    bp = jnp.zeros((1, Cp_out), jnp.float32).at[0, :C_out].set(conv_b)

    args = [xcl, Wc, bp]
    in_specs = [
        pl.BlockSpec((bt, T, Cp_in), lambda g: (g, 0, 0)),
        pl.BlockSpec((K * Cp_in, Nw), lambda g: (0, 0)),   # grid-invariant weights
        pl.BlockSpec((1, Cp_out), lambda g: (0, 0)),
    ]
    if has_ds:
        bdp = jnp.zeros((1, Cp_out), jnp.float32).at[0, :C_out].set(ds_b)
        args.append(bdp)
        in_specs.append(pl.BlockSpec((1, Cp_out), lambda g: (0, 0)))

    kernel = _make_tcn_block_kernel(bt, T, Cp_in, Cp_out, K, dilation, has_ds)

    out = pl.pallas_call(
        kernel,
        out_shape=jax.ShapeDtypeStruct((B, T, Cp_out), jnp.float32),
        grid=(B // bt,),
        in_specs=in_specs,
        out_specs=pl.BlockSpec((bt, T, Cp_out), lambda g: (g, 0, 0)),
        scratch_shapes=[pltpu.VMEM((bt, halo_s + T, Cp_in), jnp.float32)],
        compiler_params=pltpu.CompilerParams(
            dimension_semantics=("parallel",)),
    )(*args)

    # Strip lane padding and return in PyTorch (B, C_out, T) layout.
    return jnp.transpose(out[:, :, :C_out], (0, 2, 1))


def tcn_block_reference(x, conv_w, conv_b, ds_w, ds_b, dilation,
                        matmul_dtype=jnp.bfloat16):
    """Pure-JAX reference of TCNBlock.forward (dropout = identity).

    Matmul operands are rounded to `matmul_dtype` to mirror the kernel's MXU
    inputs (accumulation stays f32), so the comparison is tight.
    """
    f32 = jnp.float32
    B, C_in, T = x.shape
    C_out, _, K = conv_w.shape
    halo = (K - 1) * dilation
    xq = x.astype(matmul_dtype).astype(f32)
    wq = conv_w.astype(matmul_dtype).astype(f32)
    xp = jnp.pad(xq, ((0, 0), (0, 0), (halo, 0)))  # causal left pad (== chomp)
    conv = jnp.zeros((B, C_out, T), f32)
    for i in range(K):
        conv = conv + jnp.einsum("oc,bct->bot", wq[:, :, i],
                                 xp[:, :, i * dilation:i * dilation + T])
    conv = conv + conv_b[None, :, None]
    h = jnp.maximum(conv, 0.0)
    if ds_w is None:
        res = x.astype(f32)
    else:
        wdq = ds_w.reshape(C_out, C_in).astype(matmul_dtype).astype(f32)
        res = jnp.einsum("oc,bct->bot", wdq, xq) + ds_b[None, :, None]
    return jnp.maximum(h + res, 0.0)


def init_tcn_block_params(key, in_channels, out_channels, kernel_size):
    """Parameters with the PyTorch module's shapes and init statistics."""
    k1, k2, k3, k4 = jax.random.split(key, 4)
    fan_in = in_channels * kernel_size
    w = jax.random.normal(k1, (out_channels, in_channels, kernel_size),
                          jnp.float32) * math.sqrt(2.0 / fan_in)
    bound = 1.0 / math.sqrt(fan_in)
    b = jax.random.uniform(k2, (out_channels,), jnp.float32, -bound, bound)
    p = {"w": w, "b": b, "wd": None, "bd": None}
    if in_channels != out_channels:   # 1x1 downsample conv on the residual path
        p["wd"] = jax.random.normal(k3, (out_channels, in_channels, 1),
                                    jnp.float32) * math.sqrt(2.0 / in_channels)
        db = 1.0 / math.sqrt(in_channels)
        p["bd"] = jax.random.uniform(k4, (out_channels,), jnp.float32, -db, db)
    return p


if __name__ == "__main__":
    # Small shapes: batch=2, seq_len=16, in_channels=4, out_channels=8, kernel=3.
    B, T, K = 2, 16, 3
    C0, C1, C2 = 4, 8, 8

    key = jax.random.PRNGKey(0)
    key, kx, kp1, kp2 = jax.random.split(key, 4)
    x = jax.random.normal(kx, (B, C0, T), jnp.float32)   # PyTorch (B, C_in, T)

    p1 = init_tcn_block_params(kp1, C0, C1, K)           # has 1x1 downsample (4 != 8)
    p2 = init_tcn_block_params(kp2, C1, C2, K)           # identity residual (8 == 8)

    y1 = tcn_block_forward(x,  p1["w"], p1["b"], p1["wd"], p1["bd"], dilation=1)
    y2 = tcn_block_forward(y1, p2["w"], p2["b"], p2["wd"], p2["bd"], dilation=2)
    y2 = jax.block_until_ready(y2)

    assert y1.shape == (B, C1, T), y1.shape
    assert y2.shape == (B, C2, T), y2.shape
    assert y2.dtype == jnp.float32

    r1 = tcn_block_reference(x,  p1["w"], p1["b"], p1["wd"], p1["bd"], dilation=1)
    r2 = tcn_block_reference(y1, p2["w"], p2["b"], p2["wd"], p2["bd"], dilation=2)
    err = max(float(jnp.max(jnp.abs(y1 - r1))), float(jnp.max(jnp.abs(y2 - r2))))
    assert err < 5e-3, f"max abs error vs reference: {err}"

    print("KERNEL_OK")
</pallas_src>

<mosaic_0001>
module attributes {stable_mosaic.version = 11 : i64} {
  func.func @kernel(%arg0: i32, %arg1: memref<2x16x128xf32, #tpu.memory_space<vmem>>, %arg2: memref<384x256xbf16, #tpu.memory_space<vmem>>, %arg3: memref<1x128xf32, #tpu.memory_space<vmem>>, %arg4: memref<1x128xf32, #tpu.memory_space<vmem>>, %arg5: memref<2x16x128xf32, #tpu.memory_space<vmem>>, %arg6: memref<2x24x128xf32, #tpu.memory_space<vmem>>) attributes {dimension_semantics = [#tpu.dimension_semantics<parallel>], iteration_bounds = array<i64: 1>, scalar_prefetch = 0 : i64, scratch_operands = 1 : i64, tpu.core_type = #tpu.core_type<tc>, window_params = [{transform_indices = @transform_0, window_bounds = array<i64: 2, 16, 128>}, {pipeline_mode = #tpu.pipeline_mode<synchronous>, transform_indices = @transform_1, window_bounds = array<i64: 384, 256>}, {pipeline_mode = #tpu.pipeline_mode<synchronous>, transform_indices = @transform_2, window_bounds = array<i64: 1, 128>}, {pipeline_mode = #tpu.pipeline_mode<synchronous>, transform_indices = @transform_3, window_bounds = array<i64: 1, 128>}, {transform_indices = @transform_4, window_bounds = array<i64: 2, 16, 128>}]} {
    %cst = arith.constant 0.000000e+00 : f32
    %0 = vector.broadcast %cst : f32 to vector<2x8x128xf32>
    %c0 = arith.constant 0 : index
    %c0_0 = arith.constant 0 : index
    %c0_1 = arith.constant 0 : index
    %1 = vector.load %arg6[%c0, %c0_0, %c0_1] : memref<2x24x128xf32, #tpu.memory_space<vmem>>, vector<2x8x128xf32>
    tpu.vector_store %arg6[%c0, %c0_0, %c0_1], %0 {strides = array<i32>} : memref<2x24x128xf32, #tpu.memory_space<vmem>>, vector<2x8x128xf32>,
    %c0_2 = arith.constant 0 : index
    %c0_3 = arith.constant 0 : index
    %c0_4 = arith.constant 0 : index
    %2 = vector.load %arg1[%c0_2, %c0_3, %c0_4] : memref<2x16x128xf32, #tpu.memory_space<vmem>>, vector<2x16x128xf32>
    %c0_5 = arith.constant 0 : index
    %c8 = arith.constant 8 : index
    %c0_6 = arith.constant 0 : index
    %3 = vector.load %arg6[%c0_5, %c8, %c0_6] : memref<2x24x128xf32, #tpu.memory_space<vmem>>, vector<2x16x128xf32>
    tpu.vector_store %arg6[%c0_5, %c8, %c0_6], %2 {strides = array<i32>} : memref<2x24x128xf32, #tpu.memory_space<vmem>>, vector<2x16x128xf32>,
    %c0_7 = arith.constant 0 : index
    %c6 = arith.constant 6 : index
    %c0_8 = arith.constant 0 : index
    %4 = vector.load %arg6[%c0_7, %c6, %c0_8] : memref<2x24x128xf32, #tpu.memory_space<vmem>>, vector<2x16x128xf32>
    %c0_9 = arith.constant 0 : index
    %c7 = arith.constant 7 : index
    %c0_10 = arith.constant 0 : index
    %5 = vector.load %arg6[%c0_9, %c7, %c0_10] : memref<2x24x128xf32, #tpu.memory_space<vmem>>, vector<2x16x128xf32>
    %c0_11 = arith.constant 0 : index
    %c8_12 = arith.constant 8 : index
    %c0_13 = arith.constant 0 : index
    %6 = vector.load %arg6[%c0_11, %c8_12, %c0_13] : memref<2x24x128xf32, #tpu.memory_space<vmem>>, vector<2x16x128xf32>
    %7 = tpu.concatenate %4, %5, %6 in 2 : vector<2x16x128xf32>, vector<2x16x128xf32>, vector<2x16x128xf32> -> vector<2x16x384xf32>
    %8 = vector.shape_cast %7 : vector<2x16x384xf32> to vector<32x384xf32>
    %9 = arith.truncf %8 : vector<32x384xf32> to vector<32x384xbf16>
    %c0_14 = arith.constant 0 : index
    %c0_15 = arith.constant 0 : index
    %10 = vector.load %arg2[%c0_14, %c0_15] : memref<384x256xbf16, #tpu.memory_space<vmem>>, vector<384x256xbf16>
    %cst_16 = arith.constant dense<0.000000e+00> : vector<32x256xf32>
    %11 = tpu.matmul %9, %10, %cst_16 {dimension_numbers = #tpu.dot_dimension_numbers<[1], [0], [0], [1], [0, 0, 1, 1], [], []>} : vector<32x384xbf16>, vector<384x256xbf16>, vector<32x256xf32> -> vector<32x256xf32>
    %12 = vector.extract_strided_slice %11 {offsets = [0, 0], sizes = [32, 128], strides = [1, 1]} : vector<32x256xf32> to vector<32x128xf32>
    %13 = vector.extract_strided_slice %11 {offsets = [0, 128], sizes = [32, 128], strides = [1, 1]} : vector<32x256xf32> to vector<32x128xf32>
    %c0_17 = arith.constant 0 : index
    %c0_18 = arith.constant 0 : index
    %14 = vector.load %arg4[%c0_17, %c0_18] : memref<1x128xf32, #tpu.memory_space<vmem>>, vector<1x128xf32>
    %15 = vector.broadcast %14 : vector<1x128xf32> to vector<32x128xf32>
    %16 = arith.addf %13, %15 : vector<32x128xf32>
    %c0_19 = arith.constant 0 : index
    %c0_20 = arith.constant 0 : index
    %17 = vector.load %arg3[%c0_19, %c0_20] : memref<1x128xf32, #tpu.memory_space<vmem>>, vector<1x128xf32>
    %18 = vector.broadcast %17 : vector<1x128xf32> to vector<32x128xf32>
    %19 = arith.addf %12, %18 : vector<32x128xf32>
    %cst_21 = arith.constant 0.000000e+00 : f32
    %20 = vector.broadcast %cst_21 : f32 to vector<32x128xf32>
    %21 = arith.maximumf %19, %20 : vector<32x128xf32>
    %22 = arith.addf %21, %16 : vector<32x128xf32>
    %cst_22 = arith.constant 0.000000e+00 : f32
    %23 = vector.broadcast %cst_22 : f32 to vector<32x128xf32>
    %24 = arith.maximumf %22, %23 : vector<32x128xf32>
    %25 = vector.shape_cast %24 : vector<32x128xf32> to vector<2x16x128xf32>
    %c0_23 = arith.constant 0 : index
    %c0_24 = arith.constant 0 : index
    %c0_25 = arith.constant 0 : index
    %26 = vector.load %arg5[%c0_23, %c0_24, %c0_25] : memref<2x16x128xf32, #tpu.memory_space<vmem>>, vector<2x16x128xf32>
    tpu.vector_store %arg5[%c0_23, %c0_24, %c0_25], %25 {strides = array<i32>} : memref<2x16x128xf32, #tpu.memory_space<vmem>>, vector<2x16x128xf32>,
    return
  }
  func.func @transform_0(%arg0: i32) -> (i32, i32, i32) {
    %c0_i32 = arith.constant 0 : i32
    %c0_i32_0 = arith.constant 0 : i32
    %c0_i32_1 = arith.constant 0 : i32
    return %arg0, %c0_i32, %c0_i32_0 : i32, i32, i32
  }
  func.func @transform_1(%arg0: i32) -> (i32, i32) {
    %c0_i32 = arith.constant 0 : i32
    %c0_i32_0 = arith.constant 0 : i32
    %c0_i32_1 = arith.constant 0 : i32
    return %c0_i32, %c0_i32_0 : i32, i32
  }
  func.func @transform_2(%arg0: i32) -> (i32, i32) {
    %c0_i32 = arith.constant 0 : i32
    %c0_i32_0 = arith.constant 0 : i32
    %c0_i32_1 = arith.constant 0 : i32
    return %c0_i32, %c0_i32_0 : i32, i32
  }
  func.func @transform_3(%arg0: i32) -> (i32, i32) {
    %c0_i32 = arith.constant 0 : i32
    %c0_i32_0 = arith.constant 0 : i32
    %c0_i32_1 = arith.constant 0 : i32
    return %c0_i32, %c0_i32_0 : i32, i32
  }
  func.func @transform_4(%arg0: i32) -> (i32, i32, i32) {
    %c0_i32 = arith.constant 0 : i32
    %c0_i32_0 = arith.constant 0 : i32
    %c0_i32_1 = arith.constant 0 : i32
    return %arg0, %c0_i32, %c0_i32_0 : i32, i32, i32
  }
}

</mosaic_0001>

<bundles_post_ra>
// kernel: tpu_custom_call.1
= control target key start
LH: loop header
LB: loop body
LE: loop exit
PB: predicated region body
PF: predicated region fallthrough
CT: control target
= control target key end

     0   :  { %9 = vsyncpa [#allocation4], 0  ;;  %s778_s0 = inlined_call_operand.hbm [shape: f32[2,16,128], index: 0, kind: input, shape index: {}]   ;;  %s779_s1 = inlined_call_operand.hbm [shape: bf16[384,256], index: 1, kind: input, shape index: {}]   ;;  %s780_s2 = inlined_call_operand.vmem [shape: f32[1,128], index: 2, kind: input, shape index: {}]   ;;  %s781_s3 = inlined_call_operand.vmem [shape: f32[1,128], index: 3, kind: input, shape index: {}]   ;;  %s782_s4 = inlined_call_operand.hbm [shape: f32[2,16,128], index: 4, kind: output, shape index: {}]  }
   0x1   :  { %10 = vsyncpa [#allocation7], 0 }
   0x2   :  { %11 = vsyncpa [#allocation5], 0  ;;  %s720_s15 = smov [#allocation3]  }
   0x3   :  { %s17_s16 = sshll.u32 %s720_s15, 4  ;;  %s18_s16 = int_to_ptr.vmem [resolvable:$true] %s17_s16 }
   0x4   :  { %s662_s17 = scalar_lea.vmem %s18_s16, 512  ;;  %p667_p1 = scmp.lt.s32.totalorder %s18_s16, %s18_s16 }
   0x5   :  { %p663_p0 = scmp.ne.s32.totalorder %s18_s16, %s662_s17  ;;  %p668_p2 = scmp.lt.s32.totalorder %s662_s17, %s662_s17 }
   0x7   :  { %p669_p3 = por %p668_p2, %p667_p1 }
   0x9   :  { %p670_p4 = pnand %p669_p3, %p663_p0 }
   0xb   :  { %673 = shalt.err (!%p670_p4)
}
   0xc   :  { %s721_s18 = smov 128   ;;  %s722_s19 = smov 8  }
   0xd   :  { %23 = dma.hbm_to_vmem [thread:$0]  %s778_s0, 512, %s18_s16, [#allocation4], %s721_s18, %s721_s18, %s722_s19  }
   0xe   :  { %s723_s22 = smov [#allocation6]  }
   0xf   :  { %s29_s23 = sshll.u32 %s723_s22, 4  ;;  %s30_s23 = int_to_ptr.vmem [resolvable:$true] %s29_s23 }
  0x10   :  { %s682_s24 = scalar_lea.vmem %s30_s23, 6144  ;;  %p687_p6 = scmp.lt.s32.totalorder %s30_s23, %s30_s23 }
  0x11   :  { %p683_p5 = scmp.ne.s32.totalorder %s30_s23, %s682_s24  ;;  %p688_p7 = scmp.lt.s32.totalorder %s682_s24, %s682_s24 }
  0x13   :  { %p689_p8 = por %p688_p7, %p687_p6 }
  0x15   :  { %p690_p9 = pnand %p689_p8, %p683_p5 }
  0x17   :  { %693 = shalt.err (!%p690_p9)
}
  0x18   :  { %35 = dma.hbm_to_vmem [thread:$0]  %s779_s1, 6144, %s30_s23, [#allocation7], %s721_s18, %s721_s18, %s722_s19  }
  0x19   :  { %714 = dma.done.wait [#allocation4], 512  }
  0x1a   :  { %715 = vsyncadd [#allocation4], 4294966784 }
  0x1b   :  { %716 = dma.done.wait [#allocation7], 6144  }
  0x1c   :  { %717 = vsyncadd [#allocation7], 4294961152  ;;  %v724_v0 = vmov 0   ;;  %v725_v1 = vmov 0.0   ;;  %v582_v2 = vld [vmem:[#allocation6 + $0x74] ss:$8 sps:$4 sm:$0xff]  }
  0x1d   :  { %448 = vmatprep.mubr.bf16.mxu1 %v724_v0  ;;  %47 = vst [vmem:[#allocation2] sm:$0xff] %v725_v1  ;;  %48 = vst [vmem:[#allocation2 + $0x18] sm:$0xff] %v725_v1  ;;  %v584_v3 = vld [vmem:[#allocation6 + $0x70] ss:$8 sps:$4 sm:$0xff]   ;;  %363 = vmatprep.subr.bf16.mxu0 %v582_v2  ;;  %v585_v4 = vld [vmem:[#allocation6 + $0x64] ss:$8 sps:$4 sm:$0xff]  }
  0x1e   :  { %364 = vmatpush1.bf16.msra.mxu0 %v584_v3  ;;  %v587_v5 = vld [vmem:[#allocation6 + $0x60] ss:$8 sps:$4 sm:$0xff]   ;;  %v588_v6 = vld [vmem:[#allocation6 + $0x54] ss:$8 sps:$4 sm:$0xff]   ;;  %v590_v7 = vld [vmem:[#allocation6 + $0x50] ss:$8 sps:$4 sm:$0xff]  }
  0x1f   :  { %365 = vmatprep.subr.bf16.mxu0 %v585_v4  ;;  %v591_v8 = vld [vmem:[#allocation6 + $0x44] ss:$8 sps:$4 sm:$0xff]   ;;  %v603_v9 = vld [vmem:[#allocation6 + $0x174] ss:$8 sps:$4 sm:$0xff]   ;;  %v605_v10 = vld [vmem:[#allocation6 + $0x170] ss:$8 sps:$4 sm:$0xff]  }
  0x20   :  { %v593_v11 = vld [vmem:[#allocation6 + $0x40] ss:$8 sps:$4 sm:$0xff]   ;;  %v594_v12 = vld [vmem:[#allocation6 + $0x34] ss:$8 sps:$4 sm:$0xff]   ;;  %416 = vmatprep.subr.bf16.mxu1 %v603_v9  ;;  %v609_v13 = vld [vmem:[#allocation6 + $0x164] ss:$8 sps:$4 sm:$0xff]  }
  0x21   :  { %417 = vmatpush1.bf16.msra.mxu1 %v605_v10  ;;  %v611_v14 = vld [vmem:[#allocation6 + $0x160] ss:$8 sps:$4 sm:$0xff]   ;;  %v596_v15 = vld [vmem:[#allocation6 + $0x30] ss:$8 sps:$4 sm:$0xff]   ;;  %v615_v16 = vld [vmem:[#allocation6 + $0x154] ss:$8 sps:$4 sm:$0xff]  }
  0x22   :  { %366 = vmatpush1.bf16.msra.mxu0 %v587_v5  ;;  %418 = vmatprep.subr.bf16.mxu1 %v609_v13  ;;  %v597_v17 = vld [vmem:[#allocation6 + $0x24] ss:$8 sps:$4 sm:$0xff]   ;;  %v617_v18 = vld [vmem:[#allocation6 + $0x150] ss:$8 sps:$4 sm:$0xff]   ;;  %v599_v20 = vld [vmem:[#allocation6 + $0x20] ss:$8 sps:$4 sm:$0xff]  }
  0x23   :  { %367 = vmatprep.subr.bf16.mxu0 %v588_v6  ;;  %v621_v19 = vld [vmem:[#allocation6 + $0x144] ss:$8 sps:$4 sm:$0xff]   ;;  %v600_v21 = vld [vmem:[#allocation6 + $0x14] ss:$8 sps:$4 sm:$0xff]   ;;  %v623_v22 = vld [vmem:[#allocation6 + $0x140] ss:$8 sps:$4 sm:$0xff]  }
  0x24   :  { %v627_v23 = vld [vmem:[#allocation6 + $0x134] ss:$8 sps:$4 sm:$0xff]   ;;  %v602_v24 = vld [vmem:[#allocation6 + $0x10] ss:$8 sps:$4 sm:$0xff]   ;;  %v606_v25 = vld [vmem:[#allocation6 + $0x4] ss:$8 sps:$4 sm:$0xff]  }
  0x25   :  { %419 = vmatpush1.bf16.msra.mxu1 %v611_v14  ;;  %v629_v26 = vld [vmem:[#allocation6 + $0x130] ss:$8 sps:$4 sm:$0xff]   ;;  %v633_v27 = vld [vmem:[#allocation6 + $0x124] ss:$8 sps:$4 sm:$0xff]   ;;  %v608_v28 = vld [vmem:[#allocation6] ss:$8 sps:$4 sm:$0xff]  }
  0x26   :  { %368 = vmatpush1.bf16.msra.mxu0 %v590_v7  ;;  %420 = vmatprep.subr.bf16.mxu1 %v615_v16  ;;  %v612_v29 = vld [vmem:[#allocation6 + $0xf4] ss:$8 sps:$4 sm:$0xff]   ;;  %v635_v30 = vld [vmem:[#allocation6 + $0x120] ss:$8 sps:$4 sm:$0xff]   ;;  %v614_v31 = vld [vmem:[#allocation6 + $0xf0] ss:$8 sps:$4 sm:$0xff]  }
  0x27   :  { %369 = vmatprep.subr.bf16.mxu0 %v591_v8  ;;  %v639_v32 = vld [vmem:[#allocation6 + $0x114] ss:$8 sps:$4 sm:$0xff]   ;;  %v49_v33 = vld [vmem:[#allocation3] sm:$0xff]  ;;  %v50_v34 = vld [vmem:[#allocation3 + $0x8] sm:$0xff] }
  0x28   :  { %53 = vst [vmem:[#allocation2 + $0x8] sm:$0xff] %v49_v33  ;;  %v618_v35 = vld [vmem:[#allocation6 + $0xe4] ss:$8 sps:$4 sm:$0xff]   ;;  %54 = vst [vmem:[#allocation2 + $0x10] sm:$0xff] %v50_v34  ;;  %v51_v36 = vld [vmem:[#allocation3 + $0x10] sm:$0xff]  ;;  %v71_v47 = vpack.c.bf16 %v50_v34, %v49_v33 }
  0x29   :  { %421 = vmatpush1.bf16.msra.mxu1 %v617_v18  ;;  %v641_v37 = vld [vmem:[#allocation6 + $0x110] ss:$8 sps:$4 sm:$0xff]   ;;  %55 = vst [vmem:[#allocation2 + $0x20] sm:$0xff] %v51_v36  ;;  %v645_v39 = vld [vmem:[#allocation6 + $0x104] ss:$8 sps:$4 sm:$0xff]  }
  0x2a   :  { %370 = vmatpush1.bf16.msra.mxu0 %v593_v11  ;;  %422 = vmatprep.subr.bf16.mxu1 %v621_v19  ;;  %v52_v38 = vld [vmem:[#allocation3 + $0x18] sm:$0xff]  ;;  %v620_v40 = vld [vmem:[#allocation6 + $0xe0] ss:$8 sps:$4 sm:$0xff]   ;;  %v630_v46 = vld [vmem:[#allocation6 + $0xc4] ss:$8 sps:$4 sm:$0xff]  }
  0x2b   :  { %371 = vmatprep.subr.bf16.mxu0 %v594_v12  ;;  %56 = vst [vmem:[#allocation2 + $0x28] sm:$0xff] %v52_v38  ;;  %v624_v41 = vld [vmem:[#allocation6 + $0xd4] ss:$8 sps:$4 sm:$0xff]   ;;  %v647_v42 = vld [vmem:[#allocation6 + $0x100] ss:$8 sps:$4 sm:$0xff]   ;;  %v74_v53 = vpack.c.bf16 %v52_v38, %v51_v36 }
  0x2c   :  { %v626_v44 = vld [vmem:[#allocation6 + $0xd0] ss:$8 sps:$4 sm:$0xff]   ;;  %v632_v49 = vld [vmem:[#allocation6 + $0xc0] ss:$8 sps:$4 sm:$0xff]   ;;  %v636_v50 = vld [vmem:[#allocation6 + $0xb4] ss:$8 sps:$4 sm:$0xff]  }
  0x2d   :  { %423 = vmatpush1.bf16.msra.mxu1 %v623_v22  ;;  %v638_v51 = vld [vmem:[#allocation6 + $0xb0] ss:$8 sps:$4 sm:$0xff]   ;;  %v642_v52 = vld [vmem:[#allocation6 + $0xa4] ss:$8 sps:$4 sm:$0xff]   ;;  %v644_v54 = vld [vmem:[#allocation6 + $0xa0] ss:$8 sps:$4 sm:$0xff]  }
  0x2e   :  { %372 = vmatpush1.bf16.msra.mxu0 %v596_v15  ;;  %424 = vmatprep.subr.bf16.mxu1 %v627_v23  ;;  %v648_v55 = vld [vmem:[#allocation6 + $0x94] ss:$8 sps:$4 sm:$0xff]   ;;  %v650_v56 = vld [vmem:[#allocation6 + $0x90] ss:$8 sps:$4 sm:$0xff]   ;;  %v651_v57 = vld [vmem:[#allocation6 + $0x84] ss:$8 sps:$4 sm:$0xff]  }
  0x2f   :  { %373 = vmatprep.subr.bf16.mxu0 %v597_v17  ;;  %v61_v43 = vld [vmem:[#allocation2 + $0x7] sm:$0xff]  ;;  %v62_v45 = vld [vmem:[#allocation2 + $0xf] sm:$0xff]  ;;  %v574_v9 = vld [vmem:[%s780_s2] ss:$0 sm:$0xff]  ;;  %s726_s2 = smov [#allocation8]  }
  0x30   :  { %v70_v48 = vpack.c.bf16 %v62_v45, %v61_v43  ;;  %v653_v58 = vld [vmem:[#allocation6 + $0x80] ss:$8 sps:$4 sm:$0xff]   ;;  %v57_v59 = vld [vmem:[#allocation2 + $0x6] sm:$0xff]  ;;  %v59_v1 = vld [vmem:[#allocation2 + $0x1e] sm:$0xff] }
  0x31   :  { %425 = vmatpush1.bf16.msra.mxu1 %v629_v26  ;;  %v58_v60 = vld [vmem:[#allocation2 + $0xe] sm:$0xff]  ;;  %v63_v61 = vld [vmem:[#allocation2 + $0x1f] sm:$0xff] }
  0x32   :  { %374 = vmatpush1.bf16.msra.mxu0 %v599_v20  ;;  %426 = vmatprep.subr.bf16.mxu1 %v633_v27  ;;  %v64_v62 = vld [vmem:[#allocation2 + $0x27] sm:$0xff]  ;;  %v69_v63 = vpack.c.bf16 %v58_v60, %v57_v59  ;;  %v573_v12 = vld [vmem:[%s781_s3] ss:$0 sm:$0xff]  ;;  %s512_s3 = sshll.u32 %s726_s2, 4  ;;  %s513_s3 = int_to_ptr.vmem [resolvable:$true] %s512_s3 }
  0x33   :  { %375 = vmatprep.subr.bf16.mxu0 %v600_v21  ;;  %395 = vmatprep.mubr.bf16.mxu0 %v70_v48  ;;  %v60_v2 = vld [vmem:[#allocation2 + $0x26] sm:$0xff]  ;;  %s694_s29 = scalar_lea.vmem %s513_s3, 512  ;;  %p699_p11 = scmp.lt.s32.totalorder %s513_s3, %s513_s3 }
  0x34   :  { %v72_v3 = vpack.c.bf16 %v60_v2, %v59_v1  ;;  %p695_p10 = scmp.ne.s32.totalorder %s513_s3, %s694_s29  ;;  %p700_p12 = scmp.lt.s32.totalorder %s694_s29, %s694_s29 }
  0x35   :  { %427 = vmatpush1.bf16.msra.mxu1 %v635_v30 }
  0x36   :  { %376 = vmatpush1.bf16.msra.mxu0 %v602_v24  ;;  %428 = vmatprep.subr.bf16.mxu1 %v639_v32  ;;  %p701_p13 = por %p700_p12, %p699_p11 }
  0x37   :  { %377 = vmatprep.subr.bf16.mxu0 %v606_v25 }
  0x38   :  { %p702_p0 = pnand %p701_p13, %p695_p10 }
  0x39   :  { %429 = vmatpush1.bf16.msra.mxu1 %v641_v37 }
  0x3a   :  { %378 = vmatpush1.bf16.msra.mxu0 %v608_v28  ;;  %430 = vmatprep.subr.bf16.mxu1 %v645_v39 }
  0x3b   :  { %379 = vmatprep.subr.bf16.mxu0 %v612_v29 }
  0x3d   :  { %431 = vmatpush1.bf16.msra.mxu1 %v647_v42 }
  0x3e   :  { %380 = vmatpush2.bf16.msra.mxu0 %v614_v31 }
  0x3f   :  { %381 = vmatprep.subr.bf16.mxu0 %v618_v35 }
  0x40   :  { %449 = vmatmul.mubr.bf16.vlgmr.msra.gmra.mxu1 %v71_v47 }
  0x41   :  { %458 = vmatprep.mubr.bf16.mxu1 %v724_v0  ;;  %v73_v0 = vpack.c.bf16 %v64_v62, %v63_v61 }
  0x42   :  { %382 = vmatpush2.bf16.msra.mxu0 %v620_v40 }
  0x43   :  { %383 = vmatprep.subr.bf16.mxu0 %v624_v41 }
  0x46   :  { %384 = vmatpush2.bf16.msra.mxu0 %v626_v44 }
  0x47   :  { %385 = vmatprep.subr.bf16.mxu0 %v630_v46 }
  0x48   :  { %459 = vmatmul.mubr.bf16.gmra.mxu1 %v74_v53 }
  0x4a   :  { %386 = vmatpush2.bf16.msra.mxu0 %v632_v49 }
  0x4b   :  { %387 = vmatprep.subr.bf16.mxu0 %v636_v50 }
  0x4e   :  { %388 = vmatpush2.bf16.msra.mxu0 %v638_v51 }
  0x4f   :  { %389 = vmatprep.subr.bf16.mxu0 %v642_v52 }
  0x52   :  { %390 = vmatpush2.bf16.msra.mxu0 %v644_v54 }
  0x53   :  { %391 = vmatprep.subr.bf16.mxu0 %v648_v55 }
  0x56   :  { %392 = vmatpush2.bf16.msra.mxu0 %v650_v56 }
  0x57   :  { %393 = vmatprep.subr.bf16.mxu0 %v651_v57 }
  0x5a   :  { %394 = vmatpush2.bf16.msra.mxu0 %v653_v58 }
  0x5d   :  { %396 = vmatmul.mubr.bf16.vlgmr.msra.gmra.mxu0 %v69_v63 }
  0x5e   :  { %405 = vmatprep.mubr.bf16.mxu0 %v73_v0 }
  0x65   :  { %406 = vmatmul.mubr.bf16.gmra.mxu0 %v72_v3 }
 0x100   :  { %v450_v4 = vpop.f32.mrf.mxu1 }
 0x102   :  { %v452_v5 = vpop.f32.mrf.mxu1 }
 0x104   :  { %v454_v6 = vpop.f32.mrf.mxu1 }
 0x106   :  { %v456_v7 = vpop.f32.mrf.mxu1 }
 0x108   :  { %v460_v13 = vpop.f32.mrf.mxu1 }
 0x10a   :  { %v462_v20 = vpop.f32.mrf.mxu1 }
 0x10c   :  { %v464_v30 = vpop.f32.mrf.mxu1 }
 0x10e   :  { %v466_v40 = vpop.f32.mrf.mxu1 }
 0x11d   :  { %v397_v8 = vpop.f32.mrf.mxu0 }
 0x11e   :  { %v451_v10 = vadd.f32 %v450_v4, %v397_v8 }
 0x11f   :  { %v399_v11 = vpop.f32.mrf.mxu0 }
 0x120   :  { %v487_v14 = vadd.f32 %v574_v9, %v451_v10  ;;  %v453_v15 = vadd.f32 %v452_v5, %v399_v11 }
 0x121   :  { %v401_v16 = vpop.f32.mrf.mxu0 }
 0x122   :  { %v491_v17 = vmax.f32 %v487_v14, 0.0  ;;  %v476_v18 = vadd.f32 %v573_v12, %v453_v15  ;;  %v455_v19 = vadd.f32 %v454_v6, %v401_v16 }
 0x123   :  { %v403_v21 = vpop.f32.mrf.mxu0 }
 0x124   :  { %v495_v22 = vadd.f32 %v491_v17, %v476_v18  ;;  %v488_v23 = vadd.f32 %v574_v9, %v455_v19  ;;  %v457_v24 = vadd.f32 %v456_v7, %v403_v21 }
 0x125   :  { %v407_v25 = vpop.f32.mrf.mxu0 }
 0x126   :  { %v499_v26 = vmax.f32 %v495_v22, 0.0  ;;  %v492_v27 = vmax.f32 %v488_v23, 0.0  ;;  %v477_v28 = vadd.f32 %v573_v12, %v457_v24  ;;  %v461_v29 = vadd.f32 %v460_v13, %v407_v25 }
 0x127   :  { %v409_v31 = vpop.f32.mrf.mxu0 }
 0x128   :  { %503 = vst [vmem:[#allocation8] sm:$0xff] %v499_v26  ;;  %v496_v32 = vadd.f32 %v492_v27, %v477_v28  ;;  %v489_v33 = vadd.f32 %v574_v9, %v461_v29  ;;  %v463_v34 = vadd.f32 %v462_v20, %v409_v31 }
 0x129   :  { %v411_v35 = vpop.f32.mrf.mxu0 }
 0x12a   :  { %v500_v36 = vmax.f32 %v496_v32, 0.0  ;;  %v493_v37 = vmax.f32 %v489_v33, 0.0  ;;  %v478_v38 = vadd.f32 %v573_v12, %v463_v34  ;;  %v465_v39 = vadd.f32 %v464_v30, %v411_v35 }
 0x12b   :  { %v413_v41 = vpop.f32.mrf.mxu0 }
 0x12c   :  { %504 = vst [vmem:[#allocation8 + $0x8] sm:$0xff] %v500_v36  ;;  %v497_v42 = vadd.f32 %v493_v37, %v478_v38  ;;  %v490_v43 = vadd.f32 %v574_v9, %v465_v39  ;;  %v467_v44 = vadd.f32 %v466_v40, %v413_v41 }
 0x12e   :  { %v501_v45 = vmax.f32 %v497_v42, 0.0  ;;  %v494_v46 = vmax.f32 %v490_v43, 0.0  ;;  %v479_v47 = vadd.f32 %v573_v12, %v467_v44 }
 0x130   :  { %505 = vst [vmem:[#allocation8 + $0x10] sm:$0xff] %v501_v45  ;;  %v498_v48 = vadd.f32 %v494_v46, %v479_v47 }
 0x132   :  { %v502_v49 = vmax.f32 %v498_v48, 0.0 }
 0x134   :  { %506 = vst [vmem:[#allocation8 + $0x18] sm:$0xff] %v502_v49 }
 0x135   :  { %705 = shalt.err (!%p702_p0)
}
 0x136   :  { %518 = dma.vmem_to_hbm [thread:$0]  %s513_s3, 512, %s782_s4, [#allocation5], %s721_s18, %s721_s18, %s722_s19  }
 0x137   :  { %718 = dma.done.wait [#allocation5], 512  }
 0x138   :  { %719 = vsyncadd [#allocation5], 4294966784 }
 0x139   :  { %522 = vsyncpa [#allocation4], 1 }
 0x13a   :  { %523 = vsyncpa [#allocation7], 1 }
 0x13b   :  { %524 = vsyncpa [#allocation5], 1 }

</bundles_post_ra>
